<compile_context>
chip_gen: v7x
topology: tpu7x:2x2x1
jax: 0.10.0
libtpu: 0.0.40
codegen_flags: <defaults>
</compile_context>

<pallas_src>
import math
import functools

import jax
import jax.numpy as jnp
from jax.experimental import pallas as pl
from jax.experimental.pallas import tpu as pltpu


def make_sinusoidal_pe(dim: int, max_len: int = 5000, dtype=jnp.float32) -> jnp.ndarray:
    """Deterministic buffer setup (matches the PyTorch __init__). Shape (max_len, dim).

    Build it once in the model dtype so the forward wrapper never has to cast.
    """
    if dim % 2 != 0:
        raise ValueError(
            f"Cannot use sin/cos positional encoding with odd dim (got dim={dim})")
    position = jnp.arange(0, max_len, dtype=jnp.float32)[:, None]            # (max_len, 1)
    div_term = jnp.exp(
        jnp.arange(0, dim, 2, dtype=jnp.float32) * -(math.log(10000.0) / dim))
    pe = jnp.zeros((max_len, dim), dtype=jnp.float32)
    pe = pe.at[:, 0::2].set(jnp.sin(position * div_term))
    pe = pe.at[:, 1::2].set(jnp.cos(position * div_term))
    return pe.astype(dtype)


# ---------------------------------------------------------------------------
# In-kernel dropout helpers (portable counter-based hash, no pltpu.prng_*).
# ---------------------------------------------------------------------------

def _uniform31(row0, shape, total_cols, seed_u32):
    """Per-element hash -> uniform ints in [0, 2^31).

    Uses the global element index (row0 + local row) * total_cols + col mixed
    with the seed through a murmur3-style finalizer.  Pure VPU integer work --
    free filler under the DMA slack of this memory-bound kernel -- and it is
    identical for any tiling of the same logical array.
    """
    rows = jax.lax.broadcasted_iota(jnp.int32, shape, 0) + row0
    cols = jax.lax.broadcasted_iota(jnp.int32, shape, 1)
    x = (rows * total_cols + cols).astype(jnp.uint32)
    x = x * jnp.uint32(0x9E3779B1)          # golden-ratio spread
    x = x ^ seed_u32
    x = x ^ (x >> jnp.uint32(16))
    x = x * jnp.uint32(0x85EBCA6B)          # murmur3 fmix32
    x = x ^ (x >> jnp.uint32(13))
    x = x * jnp.uint32(0xC2B2AE35)
    x = x ^ (x >> jnp.uint32(16))
    return (x >> jnp.uint32(1)).astype(jnp.int32)   # top 31 bits, non-negative


def _apply_dropout(y, seed_ref, row0, total_cols, dropout_p):
    keep = 1.0 - dropout_p
    r31 = _uniform31(row0, y.shape, total_cols, seed_ref[0].astype(jnp.uint32))
    # Keep probability quantized to 31 bits: bias <= 2^-31, negligible.
    thr = jnp.int32(min(int(keep * (2 ** 31)), 2 ** 31 - 1))
    # Fold the 1/keep rescale into the select; do the multiply in f32 and cast
    # once at the store (avoids a bf16-rounded 1/keep systematic error).
    scale = jnp.where(r31 < thr, jnp.float32(1.0 / keep), jnp.float32(0.0))
    return y.astype(jnp.float32) * scale


# ---------------------------------------------------------------------------
# Kernels
# ---------------------------------------------------------------------------

def _pe_seq_kernel(seed_ref, emb_ref, pe_ref, out_ref, *, dropout_p, training,
                   rows_per_batch, block_rows, total_cols):
    """Normal path. emb_ref/out_ref: (TR, C) (batch squeezed); pe_ref: (TR, C)."""
    y = emb_ref[...] + pe_ref[...]
    if training and 0.0 < dropout_p < 1.0:
        # Global row index within the (B * R) row domain -> unique mask per element.
        row0 = pl.program_id(1) * rows_per_batch + pl.program_id(0) * block_rows
        y = _apply_dropout(y, seed_ref, row0, total_cols, dropout_p)
    elif training and dropout_p >= 1.0:
        y = jnp.zeros_like(y)
    out_ref[...] = y.astype(out_ref.dtype)


def _pe_step_kernel(seed_ref, emb_ref, pe_ref, out_ref, *, dropout_p, training,
                    block_rows, total_cols):
    """Step/decode path. emb_ref/out_ref: (TR, C); pe_ref: (1, C) broadcast over rows."""
    y = emb_ref[...] + pe_ref[...]
    if training and 0.0 < dropout_p < 1.0:
        row0 = pl.program_id(0) * block_rows
        y = _apply_dropout(y, seed_ref, row0, total_cols, dropout_p)
    elif training and dropout_p >= 1.0:
        y = jnp.zeros_like(y)
    out_ref[...] = y.astype(out_ref.dtype)


# ---------------------------------------------------------------------------
# Wrapper
# ---------------------------------------------------------------------------

def _row_block(rows, bytes_per_row, itemsize, target_block_bytes):
    """Largest row-tile that keeps one block under target_block_bytes, rounded to
    the dtype's sublane packing (8 rows f32, 16 bf16, 32 int8/fp8)."""
    sub = 8 * max(1, 4 // itemsize)
    cap = max(sub, (target_block_bytes // max(bytes_per_row, 1)) // sub * sub)
    return rows if rows <= cap else int(cap)


def positional_encoding_forward(emb, pe, *, dropout_p=0.0, training=False,
                                step=None, seed=0,
                                target_block_bytes=4 * 1024 * 1024):
    """emb: (B, S, D); pe: (max_len, D) table from make_sinusoidal_pe.
    Returns (B, S, D) in emb.dtype.  Caller must vary `seed` per training step."""
    B, S, D = emb.shape
    out_dtype = emb.dtype
    itemsize = jnp.dtype(out_dtype).itemsize

    # Build pe with make_sinusoidal_pe(dtype=emb.dtype) so this is a no-op.
    if pe.dtype != out_dtype:
        pe = pe.astype(out_dtype)

    seed_arr = jnp.asarray([seed], dtype=jnp.int32)
    padded = 0

    if step is None:
        if pe.shape[0] < S:
            raise ValueError(
                f"Sequence is {S} but PositionalEncoding is limited to {pe.shape[0]}. "
                f"See max_len argument.")
        pe_used = pe[:S, :]                                       # (S, D)
        if D % 128 == 0:
            R, C = S, D
            emb_c, pe_c = emb, pe_used
        elif (S * D) % 128 == 0:
            # Free contiguous repack so the output stream is lane-dense.
            R, C = (S * D) // 128, 128
            emb_c = emb.reshape(B, R, C)
            pe_c = pe_used.reshape(R, C)
        else:
            # Pad the lane dim once in the wrapper: every store becomes a
            # full-lane vst instead of masked vst.msk partial stores.
            C = ((D + 127) // 128) * 128
            padded = C - D
            R = S
            emb_c = jnp.pad(emb, ((0, 0), (0, 0), (0, padded)))
            pe_c = jnp.pad(pe_used, ((0, 0), (0, padded)))

        TR = _row_block(R, C * itemsize, itemsize, target_block_bytes)
        # Batch is the innermost grid axis: the pe index_map depends only on the
        # row-tile index, so its block index is unchanged across the batch loop
        # and Pallas skips the re-DMA (pe fetched once per row tile, not B times).
        grid = (pl.cdiv(R, TR), B)
        emb_spec = pl.BlockSpec((pl.Squeezed(), TR, C), lambda r, b, seed_ref: (b, r, 0))
        out_spec = pl.BlockSpec((pl.Squeezed(), TR, C), lambda r, b, seed_ref: (b, r, 0))
        pe_spec = pl.BlockSpec((TR, C), lambda r, b, seed_ref: (r, 0))
        kernel = functools.partial(
            _pe_seq_kernel, dropout_p=float(dropout_p), training=bool(training),
            rows_per_batch=R, block_rows=TR, total_cols=C)
        out_shape = jax.ShapeDtypeStruct((B, R, C), out_dtype)
        dims = ("parallel", "parallel")
        pe_block_rows = TR
    else:
        step = int(step)
        if not (0 <= step < pe.shape[0]):
            raise ValueError(
                f"step={step} out of range for PositionalEncoding max_len={pe.shape[0]}.")
        # Stepwise decoding: one PE row broadcast over every (batch, position)
        # row.  Collapse (B, S, D) -> (B*S, D) so blocks are sublane/lane dense
        # and the whole batch runs in ~ceil(B*S/TR) grid steps instead of B.
        rows = B * S
        pe_row = pe[step:step + 1, :]                             # (1, D)
        if D % 128 == 0:
            C = D
            emb_c = emb.reshape(rows, D)
            pe_c = pe_row
        else:
            C = ((D + 127) // 128) * 128
            padded = C - D
            emb_c = jnp.pad(emb.reshape(rows, D), ((0, 0), (0, padded)))
            pe_c = jnp.pad(pe_row, ((0, 0), (0, padded)))

        TR = _row_block(rows, C * itemsize, itemsize, target_block_bytes)
        grid = (pl.cdiv(rows, TR),)
        emb_spec = pl.BlockSpec((TR, C), lambda i, seed_ref: (i, 0))
        out_spec = pl.BlockSpec((TR, C), lambda i, seed_ref: (i, 0))
        pe_spec = pl.BlockSpec((1, C), lambda i, seed_ref: (0, 0))
        kernel = functools.partial(
            _pe_step_kernel, dropout_p=float(dropout_p), training=bool(training),
            block_rows=TR, total_cols=C)
        out_shape = jax.ShapeDtypeStruct((rows, C), out_dtype)
        dims = ("parallel",)
        pe_block_rows = 1

    # VMEM budget: emb + out + pe, each double-buffered.  Only raise the scoped
    # limit when the footprint exceeds the smallest default (v5e: 16 MiB), and
    # cap it below v7x's 32 MiB scoped / 64 MiB physical budget.
    block_bytes = TR * C * itemsize
    live_bytes = 2 * (2 * block_bytes + pe_block_rows * C * itemsize)
    cp_kwargs = {"dimension_semantics": dims}
    if live_bytes > 14 * 1024 * 1024:
        cp_kwargs["vmem_limit_bytes"] = int(min(31 * 1024 * 1024,
                                                live_bytes + 4 * 1024 * 1024))

    out = pl.pallas_call(
        kernel,
        out_shape=out_shape,
        grid_spec=pltpu.PrefetchScalarGridSpec(
            num_scalar_prefetch=1,
            grid=grid,
            in_specs=[emb_spec, pe_spec],
            out_specs=out_spec,
        ),
        compiler_params=pltpu.CompilerParams(**cp_kwargs),
    )(seed_arr, emb_c, pe_c)

    if step is None:
        if padded:
            out = out[:, :, :D]
        return out.reshape(B, S, D)
    else:
        if padded:
            out = out[:, :D]
        return out.reshape(B, S, D)


if __name__ == "__main__":
    # Small shapes consistent with the module: batch=2, seq=8, dim=32.
    B, S, D = 2, 8, 32
    key = jax.random.PRNGKey(0)
    emb = jax.random.normal(key, (B, S, D), dtype=jnp.float32)
    pe = make_sinusoidal_pe(D, max_len=5000)

    # Eval-mode forward (dropout is identity, matching nn.Dropout.eval()).
    out = jax.block_until_ready(
        positional_encoding_forward(emb, pe, dropout_p=0.1, training=False))
    ref = emb + pe[:S, :][None, :, :]
    assert out.shape == (B, S, D)
    assert jnp.allclose(out, ref, atol=1e-6), "eval-path mismatch vs reference"

    # Step path (stepwise decoding, seq_len = 1).
    emb_step = jax.random.normal(jax.random.PRNGKey(1), (B, 1, D), dtype=jnp.float32)
    out_step = jax.block_until_ready(
        positional_encoding_forward(emb_step, pe, dropout_p=0.1, training=False, step=3))
    ref_step = emb_step + pe[3, :][None, None, :]
    assert jnp.allclose(out_step, ref_step, atol=1e-6), "step-path mismatch vs reference"

    # Training-mode dropout smoke test at a lane-aligned shape: every output
    # element must be either 0 or (emb + pe) / keep, and roughly p of them zero.
    # TODO(synk): the in-kernel hash PRNG will not bit-match torch's dropout RNG stream.
    Bt, St, Dt, p = 2, 32, 128, 0.5
    emb_tr = jax.random.normal(jax.random.PRNGKey(2), (Bt, St, Dt), dtype=jnp.float32)
    pe_tr = make_sinusoidal_pe(Dt, max_len=5000)
    out_tr = jax.block_until_ready(
        positional_encoding_forward(emb_tr, pe_tr, dropout_p=p, training=True, seed=123))
    ref_tr = emb_tr + pe_tr[:St, :][None, :, :]
    scaled_ref = ref_tr / (1.0 - p)
    is_zero = jnp.isclose(out_tr, 0.0, atol=1e-6)
    is_scaled = jnp.isclose(out_tr, scaled_ref, atol=1e-4, rtol=1e-4)
    assert bool(jnp.all(is_zero | is_scaled)), "training dropout output invalid"
    drop_frac = float(jnp.mean(is_zero.astype(jnp.float32)))
    assert 0.3 < drop_frac < 0.7, f"dropout fraction {drop_frac} far from p={p}"

    print("KERNEL_OK")
</pallas_src>

<mosaic_0001>
module attributes {stable_mosaic.version = 11 : i64} {
  func.func @_pe_seq_kernel(%arg0: i32, %arg1: i32, %arg2: memref<1xi32, #tpu.memory_space<smem>>, %arg3: memref<1x2x128xf32, #tpu.memory_space<vmem>>, %arg4: memref<2x128xf32, #tpu.memory_space<vmem>>, %arg5: memref<1x2x128xf32, #tpu.memory_space<vmem>>) attributes {dimension_semantics = [#tpu.dimension_semantics<parallel>, #tpu.dimension_semantics<parallel>], iteration_bounds = array<i64: 1, 2>, scalar_prefetch = 1 : i64, scratch_operands = 0 : i64, tpu.core_type = #tpu.core_type<tc>, window_params = [{transform_indices = @transform_0, window_bounds = array<i64: 1, 2, 128>}, {transform_indices = @transform_1, window_bounds = array<i64: 2, 128>}, {transform_indices = @transform_2, window_bounds = array<i64: 1, 2, 128>}]} {
    %c0 = arith.constant 0 : index
    %c0_0 = arith.constant 0 : index
    %c0_1 = arith.constant 0 : index
    %0 = vector.load %arg3[%c0, %c0_0, %c0_1] : memref<1x2x128xf32, #tpu.memory_space<vmem>>, vector<1x2x128xf32>
    %1 = vector.shape_cast %0 : vector<1x2x128xf32> to vector<2x128xf32>
    %c0_2 = arith.constant 0 : index
    %c0_3 = arith.constant 0 : index
    %2 = vector.load %arg4[%c0_2, %c0_3] : memref<2x128xf32, #tpu.memory_space<vmem>>, vector<2x128xf32>
    %3 = arith.addf %1, %2 : vector<2x128xf32>
    %c0_4 = arith.constant 0 : index
    %c0_5 = arith.constant 0 : index
    %c0_6 = arith.constant 0 : index
    %4 = vector.load %arg5[%c0_4, %c0_5, %c0_6] : memref<1x2x128xf32, #tpu.memory_space<vmem>>, vector<1x2x128xf32>
    %5 = vector.shape_cast %4 : vector<1x2x128xf32> to vector<2x128xf32>
    %6 = vector.shape_cast %3 : vector<2x128xf32> to vector<1x2x128xf32>
    tpu.vector_store %arg5[%c0_4, %c0_5, %c0_6], %6 {strides = array<i32>} : memref<1x2x128xf32, #tpu.memory_space<vmem>>, vector<1x2x128xf32>,
    return
  }
  func.func @transform_0(%arg0: i32, %arg1: i32, %arg2: memref<1xi32, #tpu.memory_space<smem>>) -> (i32, i32, i32) {
    %c0_i32 = arith.constant 0 : i32
    %c0_i32_0 = arith.constant 0 : i32
    return %arg1, %arg0, %c0_i32 : i32, i32, i32
  }
  func.func @transform_1(%arg0: i32, %arg1: i32, %arg2: memref<1xi32, #tpu.memory_space<smem>>) -> (i32, i32) {
    %c0_i32 = arith.constant 0 : i32
    %c0_i32_0 = arith.constant 0 : i32
    return %arg0, %c0_i32 : i32, i32
  }
  func.func @transform_2(%arg0: i32, %arg1: i32, %arg2: memref<1xi32, #tpu.memory_space<smem>>) -> (i32, i32, i32) {
    %c0_i32 = arith.constant 0 : i32
    %c0_i32_0 = arith.constant 0 : i32
    return %arg1, %arg0, %c0_i32 : i32, i32, i32
  }
}

</mosaic_0001>

<bundles_post_ra>
// kernel: tpu_custom_call.1
= control target key start
LH: loop header
LB: loop body
LE: loop exit
PB: predicated region body
PF: predicated region fallthrough
CT: control target
= control target key end

     0   :  { %9 = vsyncpa [#allocation5], 0  ;;  %s696_s0 = inlined_call_operand.<no memory space> [shape: s32[1], index: 0, kind: input, shape index: {}]   ;;  %s697_s1 = inlined_call_operand.hbm [shape: f32[2,2,128], index: 1, kind: input, shape index: {}]   ;;  %s698_s2 = inlined_call_operand.vmem [shape: f32[2,128], index: 2, kind: input, shape index: {}]   ;;  %s699_s3 = inlined_call_operand.hbm [shape: f32[2,2,128], index: 3, kind: output, shape index: {}]  }
   0x1   :  { %11 = vsyncpa [#allocation5 + $0x1], 0 }
   0x2   :  { %12 = vsyncpa [#allocation6], 0 }
   0x3   :  { %14 = vsyncpa [#allocation6 + $0x1], 0  ;;  %s521_s12 = smov 0   ;;  %s523_s13 = smov 0  }
   0x4   :  { %s525_s14 = smov 0   ;;  %s527_s0 = smov 0  }
   0x5   :  { %s529_s15 = smov 0   ;;  %s531_s16 = smov 0  }
   0x6 LB: > { %s309_s17 = sadd.s32 4294967295, %s497_s16   ;;  %s310_s18 = sadd.s32 4294967294, %s497_s16   ;;  %s497_s16 = sphi %s531_s16, %s20_s16   ;;  %s493_s15 = sphi %s529_s15, %s715_s15   ;;  %s489_s0 = sphi %s527_s0, %s714_s0   ;;  %s485_s14 = sphi %s525_s14, %s713_s14   ;;  %s481_s13 = sphi %s523_s13, %s712_s13   ;;  %s477_s12 = sphi %s521_s12, %s711_s12  }
   0x7   : > { %s29_s19 = sadd.s32 1, %s493_s15  ;;  %s41_s20 = sadd.s32 1, %s485_s14 }
   0x8   : > { %p30_p0 = scmp.ge.s32.totalorder %s29_s19, 2  ;;  %p48_p1 = scmp.ne.s32.totalorder %s485_s14, %s481_s13 }
   0x9   : > { %p49_p2 = scmp.eq.s32.totalorder %s497_s16, 0  ;;  %p54_p3 = scmp.ne.s32.totalorder %s481_s13, %s477_s12 }
   0xa   : > { %s717_s19 = smov (%p30_p0, %s29_s19), 0  ;;  %p55_p5 = scmp.eq.s32.totalorder %s309_s17, 0 }
   0xb   : > { %p562_p4 = por %p49_p2, %p48_p1  ;;  %s36_s22 = ssub.s32 %s493_s15, %s717_s19 }
   0xc   : > { %p106_p6 = scmp.eq.s32.totalorder %s309_s17, 1  ;;  %p39_p7 = scmp.eq.s32.totalorder %s36_s22, 0 }
   0xd   : > { %p568_p8 = por %p55_p5, %p54_p3  ;;  %p112_p10 = scmp.eq.s32.totalorder %s310_s18, 1 }
   0xe   : > { %p572_p9 = por %p106_p6, %p48_p1  ;;  %p335_p13 = scmp.lt.s32.totalorder %s497_s16, 2 }
   0xf   : > { %s577_s25 = scalar_select %p39_p7, %s485_s14, %s41_s20  }
  0x10   : > { %s703_s24 = scalar_select %p572_p9, 1, 0 }
  0x11   : > { %p579_p11 = por %p112_p10, %p54_p3  ;;  %s139_s27 = sand.u32 1, %s485_s14  }
  0x12   : > { %s314_s28 = sshll.u32 %s139_s27, 1  ;;  %s315_s29 = sshll.u32 %s493_s15, 5 }
  0x13   : > { %s704_s26 = scalar_select %p579_p11, 1, 0 }
  0x14   : > { %s590_s5 = scalar_lea.hbm %s697_s1, %s315_s29  ;;  %s143_s6 = scalar_lea.vmem [#allocation4], %s314_s28 }
  0x15   : > { %s151_s7 = sshll.u32 %s143_s6, 4  ;;  %p596_p0 = pnand %p335_p13, %p562_p4  ;;  %s592_s7 = int_to_ptr.vmem [resolvable:$true] %s151_s7 }
  0x16   : > { %s140_s9 = scalar_lea.sflag [#allocation5], %s139_s27  ;;  %s385_s10 = scalar_lea.hbm %s590_s5, 32 }
  0x17   : > { %p386_p3 = scmp.ne.s32.totalorder %s590_s5, %s385_s10  ;;  %p387_p5 = pneg %p596_p0 }
  0x18   : > { %s390_s18 = scalar_lea.hbm %s697_s1, 64  ;;  %p391_p4 = scmp.lt.u32.totalorder %s590_s5, %s697_s1 }
  0x19   : > { %p388_p6 = pnand %p387_p5, %p386_p3  ;;  %p392_p10 = scmp.lt.u32.totalorder %s390_s18, %s385_s10 }
  0x1a   : > { %p394_p12 = scmp.lt.u32.totalorder %s385_s10, %s590_s5 }
  0x1b   : > { %p389_p7 = pneg %p388_p6  ;;  %p393_p13 = por %p392_p10, %p391_p4 }
  0x1d   : > { %p395_p1 = por %p394_p12, %p393_p13 }
  0x1f   : > { %p396_p2 = pnand %p395_p1, %p389_p7 }
  0x21   : > { %399 = shalt.err (!%p396_p2)
}
  0x22   : > { %s400_s22 = scalar_lea.vmem %s592_s7, 32  ;;  %s499_s27 = smov [#allocation4]  }
  0x23   : > { %p401_p3 = scmp.ne.s32.totalorder %s592_s7, %s400_s22  ;;  %s405_s28 = sshll.u32 %s499_s27, 4  ;;  %s406_s28 = int_to_ptr.vmem [resolvable:$false] %s405_s28 }
  0x24   : > { %s407_s29 = scalar_lea.vmem %s406_s28, 64  ;;  %p408_p9 = scmp.lt.s32.totalorder %s592_s7, %s406_s28 }
  0x25   : > { %p403_p6 = pnand %p401_p3, %p387_p5  ;;  %p409_p4 = scmp.lt.s32.totalorder %s407_s29, %s400_s22 }
  0x27   : > { %p404_p11 = pneg %p403_p6  ;;  %p410_p10 = por %p409_p4, %p408_p9 }
  0x29   : > { %p411_p12 = pnand %p410_p10, %p404_p11 }
  0x2b   : > { %414 = shalt.err (!%p411_p12)
}
  0x2c   : > { %330 = dma.hbm_to_vmem [thread:$0]  (!%p596_p0), %s590_s5, 32, %s592_s7, %s140_s9  }
  0x2d   : > { %p706_p1 = scmp.lt.s32.totalorder %s497_s16, 3  ;;  %p707_p2 = scmp.ge.s32.totalorder %s497_s16, 1 }
  0x2f   : > { %p157_p5 = pnand %p707_p2, %p706_p1 }
  0x30   : > { %s632_s30 = sand.u32 (!%p157_p5), 1, %s481_s13  }
  0x31   : > { %160 = sbr.rel (%p157_p5) target bundleno = 83 (0x53), region = 28  ;;  %s317_s4 = sshll.u32 (!%p157_p5), %s632_s30, 1 }
  0x32   : > { %s163_s6 = scalar_lea.sflag (!%p157_p5), [#allocation5], %s632_s30  ;;  %s166_s10 = scalar_lea.vmem (!%p157_p5), [#allocation4], %s317_s4 }
  0x38   : > { %468 = dma.done.wait (%p568_p8), %s163_s6, 32  }
  0x39   : > { %470 = vsyncadd (%p568_p8), %s163_s6, 4294967264  ;;  %s190_s5 = scalar_lea.vmem [#allocation7], %s317_s4  ;;  %s320_s8 = sshll.u32 %s489_s0, 5  ;;  %v195_v0 = vld [vmem:[%s166_s10] sm:$0x3] }
  0x3a   : > { %s214_s7 = sshll.u32 %s190_s5, 4  ;;  %v196_v1 = vld [vmem:[%s698_s2] sm:$0x3]  ;;  %s649_s23 = scalar_lea.hbm %s699_s3, %s320_s8  ;;  %s644_s7 = int_to_ptr.vmem [resolvable:$true] %s214_s7 }
  0x3b   : > { %v197_v2 = vadd.f32 %v196_v1, %v195_v0  ;;  %s200_s20 = scalar_lea.sflag [#allocation6], %s632_s30  ;;  %s415_s21 = scalar_lea.vmem %s644_s7, 32 }
  0x3c   : > { %p416_p8 = scmp.ne.s32.totalorder %s644_s7, %s415_s21  ;;  %p708_p9 = scmp.ne.s32.totalorder %s703_s24, 0 }
  0x3d   : > { %198 = vst [vmem:[%s190_s5] sm:$0x3] %v197_v2  ;;  %s500_s0 = smov [#allocation7]  }
  0x3e   : > { %p417_p11 = pnand %p416_p8, %p708_p9  ;;  %s419_s22 = sshll.u32 %s500_s0, 4  ;;  %s420_s22 = int_to_ptr.vmem [resolvable:$false] %s419_s22 }
  0x3f   : > { %s421_s27 = scalar_lea.vmem %s420_s22, 64  ;;  %p422_p7 = scmp.lt.s32.totalorder %s644_s7, %s420_s22 }
  0x40   : > { %p418_p0 = pneg %p417_p11  ;;  %p423_p13 = scmp.lt.s32.totalorder %s421_s27, %s415_s21 }
  0x42   : > { %p424_p3 = por %p423_p13, %p422_p7 }
  0x44   : > { %p425_p6 = pnand %p424_p3, %p418_p0 }
  0x46   : > { %428 = shalt.err (!%p425_p6)
}
  0x47   : > { %s429_s28 = scalar_lea.hbm %s649_s23, 32  ;;  %s433_s4 = scalar_lea.hbm %s699_s3, 64 }
  0x48   : > { %p430_p4 = scmp.ne.s32.totalorder %s649_s23, %s429_s28  ;;  %p434_p1 = scmp.lt.u32.totalorder %s649_s23, %s699_s3 }
  0x49   : > { %p435_p2 = scmp.lt.u32.totalorder %s433_s4, %s429_s28  ;;  %p437_p8 = scmp.lt.u32.totalorder %s429_s28, %s649_s23 }
  0x4a   : > { %p431_p10 = pnand %p430_p4, %p708_p9 }
  0x4b   : > { %p436_p5 = por %p435_p2, %p434_p1 }
  0x4c   : > { %p432_p12 = pneg %p431_p10 }
  0x4d   : > { %p438_p11 = por %p437_p8, %p436_p5 }
  0x4f   : > { %p439_p0 = pnand %p438_p11, %p432_p12 }
  0x51   : > { %442 = shalt.err (!%p439_p0)
}
  0x52   : > { %325 = dma.vmem_to_hbm [thread:$0]  (%p708_p9), %s644_s7, 32, %s649_s23, %s200_s20  }
  0x53 PF: > { %s226_s5 = sand.u32 1, %s477_s12   ;;  %p709_p7 = scmp.ne.s32.totalorder %s704_s26, 0 }
  0x54   : > { %p710_p13 = scmp.ge.s32.totalorder %s497_s16, 2  ;;  %s227_s8 = scalar_lea.sflag [#allocation6], %s226_s5 }
  0x56   : > { %p332_p3 = pnand %p710_p13, %p709_p7 }
  0x58   : > { %472 = dma.done.wait (!%p332_p3), %s227_s8, 32  }
  0x59   : > { %474 = vsyncadd (!%p332_p3), %s227_s8, 4294967264  ;;  %s20_s16 = sadd.s32 1, %s497_s16   ;;  %s711_s12 = smov %s481_s13 }
  0x5a   : > { %p17_p6 = scmp.ge.s32.totalorder %s20_s16, 4   ;;  %s712_s13 = smov %s485_s14 }
  0x5b   : > { %s713_s14 = smov %s577_s25  ;;  %s714_s0 = smov %s493_s15 }
  0x5c   : > { %s715_s15 = smov %s717_s19  ;;  %19 = sbr.rel (!%p17_p6) target bundleno = 6 (0x6), region = 76 }
  0x63   :  { %232 = vsyncpa [#allocation5], 1 }
  0x64   :  { %234 = vsyncpa [#allocation5 + $0x1], 1 }
  0x65   :  { %235 = vsyncpa [#allocation6], 1 }
  0x66   :  { %237 = vsyncpa [#allocation6 + $0x1], 1 }

</bundles_post_ra>
